<compile_context>
chip_gen: v5e
topology: v5e:2x2
jax: 0.10.0
libtpu: 0.0.40
codegen_flags: <defaults>
</compile_context>

<pallas_src>
import functools

import numpy as np
import jax
import jax.numpy as jnp
from jax import lax
from jax.experimental import pallas as pl
from jax.experimental.pallas import tpu as pltpu


def _round_up(x: int, m: int) -> int:
    return (x + m - 1) // m * m


def _choose_row_tile(n: int, max_tile: int, min_steps: int) -> int:
    """Row tile: large (amortize per-step overhead) but small enough to keep
    >= min_steps grid steps (v7x megacore sharding of the 'parallel' axis);
    multiple of 128 when possible (clean MXU / sub-tile shapes), always a
    multiple of 8."""
    target = pl.cdiv(n, min_steps)
    tm = min(max_tile, _round_up(target, 128))
    tm = min(tm, _round_up(n, 8))
    return max(tm, 8)


def _choose_sub_rows(tm: int) -> int:
    # 128-row sub-tiles keep the hidden activation (sub x hidden f32) small
    # enough to live in vector registers between the two matmuls.
    for sub in (128, 64, 32, 16, 8):
        if tm % sub == 0:
            return sub
    return tm


def _mlp_ode_kernel(x_ref, w1_ref, b1_ref, w2_ref, b2_ref, o_ref, *, sub_rows):
    """out = fc2(relu(fc1(x))) for one row tile.

    Weights arrive in the MXU compute dtype (bf16 by default, see
    prepare_dynamics_mlp_params); biases and accumulation are f32.  Rows are
    processed in `sub_rows` chunks with an unrolled fori_loop so each chunk's
    hidden activation stays in vregs and fc1/relu/fc2 interleave in the VLIW
    schedule.  No cross-row reductions anywhere (required for the ragged last
    grid block, whose trailing rows contain unspecified data).
    """
    cdt = w1_ref.dtype                     # MXU input dtype (bf16 or f32)
    w1 = w1_ref[...]
    w2 = w2_ref[...]
    b1 = b1_ref[...]                       # (1, hidden)  f32
    b2 = b2_ref[...]                       # (1, out)     f32
    n_sub = x_ref.shape[0] // sub_rows

    def body(i, carry):
        r0 = pl.multiple_of(i * sub_rows, sub_rows)
        xs = x_ref[pl.ds(r0, sub_rows), :].astype(cdt)
        h = jnp.dot(xs, w1, preferred_element_type=jnp.float32)
        h = jnp.maximum(h + b1, 0.0)       # bias + ReLU in f32 on the VPU
        out = jnp.dot(h.astype(cdt), w2, preferred_element_type=jnp.float32)
        o_ref[pl.ds(r0, sub_rows), :] = (out + b2).astype(o_ref.dtype)
        return carry

    lax.fori_loop(0, n_sub, body, 0, unroll=True)


def prepare_dynamics_mlp_params(w1, b1, w2, b2, compute_dtype=jnp.bfloat16):
    """One-time parameter prep.  Call ONCE, outside the ODE solver loop.

    * Pads hidden / output channel dims to multiples of 128 so MXU lanes are
      full and output stores are lane-dense.  Zero padding is exact: padded
      hidden columns produce relu(0 + 0) = 0 and the matching zero rows of w2
      contribute nothing; padded output columns are 0 and get sliced off.
    * Casts the matmul operands to `compute_dtype` (bf16 -> full-rate MXU,
      half the weight bytes); biases stay f32 for the f32 epilogue.

    w1: [in, hidden] (= torch fc1.weight.T), b1: [hidden]
    w2: [hidden, out] (= torch fc2.weight.T), b2: [out]
    """
    cin, ch = w1.shape
    ch2, cout = w2.shape
    assert ch == ch2
    ch_p = _round_up(ch, 128)
    cout_p = _round_up(cout, 128)
    f32 = jnp.float32
    w1p = jnp.pad(w1.astype(f32), ((0, 0), (0, ch_p - ch))).astype(compute_dtype)
    b1p = jnp.pad(b1.astype(f32), (0, ch_p - ch)).reshape(1, ch_p)
    w2p = jnp.pad(w2.astype(f32), ((0, ch_p - ch), (0, cout_p - cout))).astype(compute_dtype)
    b2p = jnp.pad(b2.astype(f32), (0, cout_p - cout)).reshape(1, cout_p)
    return w1p, b1p, w2p, b2p


def dynamics_mlp_ode(t, x, w1, b1, w2, b2, *, out_channels=None,
                     max_row_tile=1024, min_grid_steps=4,
                     out_dtype=jnp.float32):
    """Pallas equivalent of DynamicsMLP_ODE.forward(t, x) = fc2(relu(fc1(x))).

    Args:
      t:  unused scalar (ODE interface fidelity).
      x:  [N, in_channels] (f32 or bf16; passing the ODE state in bf16 halves
          the kernel's HBM read traffic — the kernel casts to the weights'
          dtype internally either way, so no per-call wrapper cast is done).
      w1, b1, w2, b2: as produced by prepare_dynamics_mlp_params (hoisted).
      out_channels: true output width (only needed if cout was padded).
    Returns:
      [N, out_channels] in out_dtype.
    """
    del t  # forward() ignores t

    n, cin = x.shape
    assert w1.shape[0] == cin
    ch_p = w1.shape[1]
    cout_p = w2.shape[1]
    out_channels = cout_p if out_channels is None else out_channels

    tm = _choose_row_tile(n, max_row_tile, min_grid_steps)
    sub_rows = _choose_sub_rows(tm)
    grid = (pl.cdiv(n, tm),)

    cost = pl.CostEstimate(
        flops=2 * n * (cin * ch_p + ch_p * cout_p),
        transcendentals=0,
        bytes_accessed=(n * cin * x.dtype.itemsize
                        + n * cout_p * np.dtype(out_dtype).itemsize
                        + w1.size * w1.dtype.itemsize
                        + w2.size * w2.dtype.itemsize
                        + (b1.size + b2.size) * 4),
    )

    kernel = functools.partial(_mlp_ode_kernel, sub_rows=sub_rows)

    out = pl.pallas_call(
        kernel,
        out_shape=jax.ShapeDtypeStruct((n, cout_p), out_dtype),
        grid=grid,
        in_specs=[
            # x: tiled along rows, software-pipelined HBM<->VMEM; the last
            # (possibly partial) block is handled by the bounded DMA.
            pl.BlockSpec((tm, cin), lambda i: (i, 0)),
            # Weights / biases: constant block index -> resident in VMEM
            # (Mosaic does not re-issue the DMA when the block index does not
            # change across grid steps; ~128 KiB total, so no explicit
            # single-buffering needed).
            pl.BlockSpec((cin, ch_p), lambda i: (0, 0)),
            pl.BlockSpec((1, ch_p), lambda i: (0, 0)),
            pl.BlockSpec((ch_p, cout_p), lambda i: (0, 0)),
            pl.BlockSpec((1, cout_p), lambda i: (0, 0)),
        ],
        out_specs=pl.BlockSpec((tm, cout_p), lambda i: (i, 0)),
        compiler_params=pltpu.CompilerParams(
            dimension_semantics=("parallel",),   # shard row tiles across TCs (v7x)
            vmem_limit_bytes=32 * 1024 * 1024,   # within v7x's 64 MiB physical VMEM
        ),
        cost_estimate=cost,
    )(x, w1, b1, w2, b2)

    if out_channels != cout_p:
        out = out[:, :out_channels]
    return out


def init_params(key, in_channels, hidden_channels=None, out_channels=None,
                dtype=jnp.float32):
    """Synthetic params matching _init_weights (trunc_normal std=0.02, zero bias)."""
    hidden_channels = hidden_channels or in_channels
    out_channels = out_channels or in_channels
    k1, k2 = jax.random.split(key, 2)
    # torch stores fc.weight as (out, in); we keep the transpose (in, out) so
    # the kernel computes x @ W directly.
    w1 = jax.random.normal(k1, (in_channels, hidden_channels), dtype) * 0.02
    b1 = jnp.zeros((hidden_channels,), dtype)
    w2 = jax.random.normal(k2, (hidden_channels, out_channels), dtype) * 0.02
    b2 = jnp.zeros((out_channels,), dtype)
    return w1, b1, w2, b2


if __name__ == "__main__":
    key = jax.random.PRNGKey(0)
    kx, kp = jax.random.split(key)

    # Bottleneck shapes of SpUNet-v2-ode: channels[num_stages-1] = 256, so the
    # dynamics MLP is 256 -> 128 -> 256.
    N = 1000                      # not a multiple of the row tile: exercises the
                                  # ragged last block (no host-side row padding)
    C_IN, C_HID, C_OUT = 256, 128, 256

    x = jax.random.normal(kx, (N, C_IN), jnp.float32)
    w1, b1, w2, b2 = init_params(kp, C_IN, C_HID, C_OUT)

    # One-time prep (pad to 128 multiples + cast matmul operands to bf16) —
    # done once, NOT inside the per-RHS-eval path of the ODE solver.
    w1p, b1p, w2p, b2p = prepare_dynamics_mlp_params(w1, b1, w2, b2)

    t = jnp.float32(0.0)          # unused by forward(), kept for ODE interface
    out = dynamics_mlp_ode(t, x, w1p, b1p, w2p, b2p)
    out = jax.block_until_ready(out)
    assert out.shape == (N, C_OUT)
    assert out.dtype == jnp.float32

    # Reference with matching bf16 MXU inputs / f32 accumulation.
    f32, bf16 = jnp.float32, jnp.bfloat16
    xb = x.astype(bf16).astype(f32)
    w1b = w1.astype(bf16).astype(f32)
    w2b = w2.astype(bf16).astype(f32)
    h_ref = jnp.maximum(xb @ w1b + b1, 0.0)
    ref = h_ref.astype(bf16).astype(f32) @ w2b + b2
    assert jnp.allclose(out, ref, atol=2e-3, rtol=2e-2), \
        float(jnp.max(jnp.abs(out - ref)))

    # Loose sanity check against the pure-f32 module math (bf16 rounding only).
    ref32 = jnp.maximum(x @ w1 + b1, 0.0) @ w2 + b2
    assert jnp.allclose(out, ref32, atol=5e-2, rtol=5e-1)

    print("KERNEL_OK")
</pallas_src>

<mosaic_0001>
module attributes {stable_mosaic.version = 11 : i64} {
  func.func @_mlp_ode_kernel(%arg0: i32, %arg1: memref<256x256xf32, #tpu.memory_space<vmem>>, %arg2: memref<256x128xbf16, #tpu.memory_space<vmem>>, %arg3: memref<1x128xf32, #tpu.memory_space<vmem>>, %arg4: memref<128x256xbf16, #tpu.memory_space<vmem>>, %arg5: memref<1x256xf32, #tpu.memory_space<vmem>>, %arg6: memref<256x256xf32, #tpu.memory_space<vmem>>) attributes {dimension_semantics = [#tpu.dimension_semantics<parallel>], iteration_bounds = array<i64: 4>, scalar_prefetch = 0 : i64, scratch_operands = 0 : i64, tpu.core_type = #tpu.core_type<tc>, window_params = [{transform_indices = @transform_0, window_bounds = array<i64: 256, 256>}, {pipeline_mode = #tpu.pipeline_mode<synchronous>, transform_indices = @transform_1, window_bounds = array<i64: 256, 128>}, {pipeline_mode = #tpu.pipeline_mode<synchronous>, transform_indices = @transform_2, window_bounds = array<i64: 1, 128>}, {pipeline_mode = #tpu.pipeline_mode<synchronous>, transform_indices = @transform_3, window_bounds = array<i64: 128, 256>}, {pipeline_mode = #tpu.pipeline_mode<synchronous>, transform_indices = @transform_4, window_bounds = array<i64: 1, 256>}, {transform_indices = @transform_5, window_bounds = array<i64: 256, 256>}]} {
    %c0 = arith.constant 0 : index
    %c0_0 = arith.constant 0 : index
    %0 = vector.load %arg2[%c0, %c0_0] : memref<256x128xbf16, #tpu.memory_space<vmem>>, vector<256x128xbf16>
    %c0_1 = arith.constant 0 : index
    %c0_2 = arith.constant 0 : index
    %1 = vector.load %arg4[%c0_1, %c0_2] : memref<128x256xbf16, #tpu.memory_space<vmem>>, vector<128x256xbf16>
    %c0_3 = arith.constant 0 : index
    %c0_4 = arith.constant 0 : index
    %2 = vector.load %arg3[%c0_3, %c0_4] : memref<1x128xf32, #tpu.memory_space<vmem>>, vector<1x128xf32>
    %c0_5 = arith.constant 0 : index
    %c0_6 = arith.constant 0 : index
    %3 = vector.load %arg5[%c0_5, %c0_6] : memref<1x256xf32, #tpu.memory_space<vmem>>, vector<1x256xf32>
    %c0_i32 = arith.constant 0 : i32
    %c128_i32 = arith.constant 128 : i32
    %4 = arith.muli %c0_i32, %c128_i32 : i32
    %5 = tpu.assume_multiple %4, 128 : i32
    %6 = arith.index_cast %5 : i32 to index
    %c0_7 = arith.constant 0 : index
    %7 = vector.load %arg1[%6, %c0_7] : memref<256x256xf32, #tpu.memory_space<vmem>>, vector<128x256xf32>
    %8 = arith.truncf %7 : vector<128x256xf32> to vector<128x256xbf16>
    %cst = arith.constant dense<0.000000e+00> : vector<128x128xf32>
    %9 = tpu.matmul %8, %0, %cst {dimension_numbers = #tpu.dot_dimension_numbers<[1], [0], [0], [1], [0, 0, 1, 1], [], []>} : vector<128x256xbf16>, vector<256x128xbf16>, vector<128x128xf32> -> vector<128x128xf32>
    %10 = vector.broadcast %2 : vector<1x128xf32> to vector<128x128xf32>
    %11 = arith.addf %9, %10 : vector<128x128xf32>
    %cst_8 = arith.constant 0.000000e+00 : f32
    %12 = vector.broadcast %cst_8 : f32 to vector<128x128xf32>
    %13 = arith.maximumf %11, %12 : vector<128x128xf32>
    %14 = arith.truncf %13 : vector<128x128xf32> to vector<128x128xbf16>
    %cst_9 = arith.constant dense<0.000000e+00> : vector<128x256xf32>
    %15 = tpu.matmul %14, %1, %cst_9 {dimension_numbers = #tpu.dot_dimension_numbers<[1], [0], [0], [1], [0, 0, 1, 1], [], []>} : vector<128x128xbf16>, vector<128x256xbf16>, vector<128x256xf32> -> vector<128x256xf32>
    %16 = vector.broadcast %3 : vector<1x256xf32> to vector<128x256xf32>
    %17 = arith.addf %15, %16 : vector<128x256xf32>
    %18 = arith.index_cast %5 : i32 to index
    %c0_10 = arith.constant 0 : index
    %19 = vector.load %arg6[%18, %c0_10] : memref<256x256xf32, #tpu.memory_space<vmem>>, vector<128x256xf32>
    tpu.vector_store %arg6[%18, %c0_10], %17 {strides = array<i32>} : memref<256x256xf32, #tpu.memory_space<vmem>>, vector<128x256xf32>,
    %c1_i32 = arith.constant 1 : i32
    %c128_i32_11 = arith.constant 128 : i32
    %20 = arith.muli %c1_i32, %c128_i32_11 : i32
    %21 = tpu.assume_multiple %20, 128 : i32
    %22 = arith.index_cast %21 : i32 to index
    %c0_12 = arith.constant 0 : index
    %23 = vector.load %arg1[%22, %c0_12] : memref<256x256xf32, #tpu.memory_space<vmem>>, vector<128x256xf32>
    %24 = arith.truncf %23 : vector<128x256xf32> to vector<128x256xbf16>
    %cst_13 = arith.constant dense<0.000000e+00> : vector<128x128xf32>
    %25 = tpu.matmul %24, %0, %cst_13 {dimension_numbers = #tpu.dot_dimension_numbers<[1], [0], [0], [1], [0, 0, 1, 1], [], []>} : vector<128x256xbf16>, vector<256x128xbf16>, vector<128x128xf32> -> vector<128x128xf32>
    %26 = vector.broadcast %2 : vector<1x128xf32> to vector<128x128xf32>
    %27 = arith.addf %25, %26 : vector<128x128xf32>
    %cst_14 = arith.constant 0.000000e+00 : f32
    %28 = vector.broadcast %cst_14 : f32 to vector<128x128xf32>
    %29 = arith.maximumf %27, %28 : vector<128x128xf32>
    %30 = arith.truncf %29 : vector<128x128xf32> to vector<128x128xbf16>
    %cst_15 = arith.constant dense<0.000000e+00> : vector<128x256xf32>
    %31 = tpu.matmul %30, %1, %cst_15 {dimension_numbers = #tpu.dot_dimension_numbers<[1], [0], [0], [1], [0, 0, 1, 1], [], []>} : vector<128x128xbf16>, vector<128x256xbf16>, vector<128x256xf32> -> vector<128x256xf32>
    %32 = vector.broadcast %3 : vector<1x256xf32> to vector<128x256xf32>
    %33 = arith.addf %31, %32 : vector<128x256xf32>
    %34 = arith.index_cast %21 : i32 to index
    %c0_16 = arith.constant 0 : index
    %35 = vector.load %arg6[%34, %c0_16] : memref<256x256xf32, #tpu.memory_space<vmem>>, vector<128x256xf32>
    tpu.vector_store %arg6[%34, %c0_16], %33 {strides = array<i32>} : memref<256x256xf32, #tpu.memory_space<vmem>>, vector<128x256xf32>,
    %c2_i32 = arith.constant 2 : i32
    return
  }
  func.func @transform_0(%arg0: i32) -> (i32, i32) {
    %c0_i32 = arith.constant 0 : i32
    %c0_i32_0 = arith.constant 0 : i32
    return %arg0, %c0_i32 : i32, i32
  }
  func.func @transform_1(%arg0: i32) -> (i32, i32) {
    %c0_i32 = arith.constant 0 : i32
    %c0_i32_0 = arith.constant 0 : i32
    %c0_i32_1 = arith.constant 0 : i32
    return %c0_i32, %c0_i32_0 : i32, i32
  }
  func.func @transform_2(%arg0: i32) -> (i32, i32) {
    %c0_i32 = arith.constant 0 : i32
    %c0_i32_0 = arith.constant 0 : i32
    %c0_i32_1 = arith.constant 0 : i32
    return %c0_i32, %c0_i32_0 : i32, i32
  }
  func.func @transform_3(%arg0: i32) -> (i32, i32) {
    %c0_i32 = arith.constant 0 : i32
    %c0_i32_0 = arith.constant 0 : i32
    %c0_i32_1 = arith.constant 0 : i32
    return %c0_i32, %c0_i32_0 : i32, i32
  }
  func.func @transform_4(%arg0: i32) -> (i32, i32) {
    %c0_i32 = arith.constant 0 : i32
    %c0_i32_0 = arith.constant 0 : i32
    %c0_i32_1 = arith.constant 0 : i32
    return %c0_i32, %c0_i32_0 : i32, i32
  }
  func.func @transform_5(%arg0: i32) -> (i32, i32) {
    %c0_i32 = arith.constant 0 : i32
    %c0_i32_0 = arith.constant 0 : i32
    return %arg0, %c0_i32 : i32, i32
  }
}

</mosaic_0001>

<bundles_post_ra>
// kernel: tpu_custom_call.1
= control target key start
LH: loop header
LB: loop body
LE: loop exit
PB: predicated region body
PF: predicated region fallthrough
CT: control target
= control target key end

     0   :  { %s2282_s0 = inlined_call_operand.hbm [shape: f32[1000,256], index: 0, kind: input, shape index: {}]   ;;  %s2283_s1 = inlined_call_operand.hbm [shape: bf16[256,128], index: 1, kind: input, shape index: {}]   ;;  %s2284_s2 = inlined_call_operand.vmem [shape: f32[1,128], index: 2, kind: input, shape index: {}]   ;;  %s2285_s3 = inlined_call_operand.hbm [shape: bf16[128,256], index: 3, kind: input, shape index: {}]   ;;  %s2286_s4 = inlined_call_operand.vmem [shape: f32[1,256], index: 4, kind: input, shape index: {}]   ;;  %s2287_s5 = inlined_call_operand.hbm [shape: f32[1000,256], index: 5, kind: output, shape index: {}]  }
   0x1   :  { %2290 = sst [smem:[#allocation12_spill]] %s2283_s1 }
   0x2   :  { %10 = vsyncpa [#allocation3], 0 }
   0x3   :  { %12 = vsyncpa [#allocation3 + $0x1], 0 }
   0x4   :  { %13 = vsyncpa [#allocation6], 0 }
   0x5   :  { %14 = vsyncpa [#allocation4], 0 }
   0x6   :  { %16 = vsyncpa [#allocation4 + $0x1], 0  ;;  %s1815_s18 = smov 0   ;;  %s1817_s19 = smov 0  }
   0x7   :  { %s1819_s20 = smov 0   ;;  %s1821_s21 = smov 0  }
   0x8 LB: > { %s1836_s22 = sadd.s32 4294967295, %s1771_s21   ;;  %s1262_s23 = sadd.s32 4294967294, %s1771_s21   ;;  %s1771_s21 = sphi %s1821_s21, %s2306_s21   ;;  %s1767_s20 = sphi %s1819_s20, %s2305_s20   ;;  %s1763_s19 = sphi %s1817_s19, %s2304_s19   ;;  %s1759_s18 = sphi %s1815_s18, %s2303_s18  }
   0x9   : > { %s1840_s24 = sadd.s32 1, %s1771_s21   ;;  %s29_s25 = sadd.s32 1, %s1767_s20 }
   0xa   : > { %s26_s26 = ssub.s32 %s1771_s21, %s1840_s24  ;;  %p36_p0 = scmp.ne.s32.totalorder %s1767_s20, %s1763_s19 }
   0xb   : > { %p27_p1 = scmp.eq.s32.totalorder %s26_s26, 0  ;;  %p37_p2 = scmp.eq.s32.totalorder %s1771_s21, 0 }
   0xc   : > { %p42_p3 = scmp.ne.s32.totalorder %s1763_s19, %s1759_s18  ;;  %p2289_p4 = scmp.eq.s32.totalorder %s1836_s22, 0 }
   0xd   : > { %s1852_s27 = scalar_select %p27_p1, %s1767_s20, %s29_s25  }
   0xe   : > { %p1854_p5 = por %p37_p2, %p36_p0  ;;  %p1860_p6 = por %p2289_p4, %p42_p3 }
   0xf   : > { %p150_p7 = scmp.eq.s32.totalorder %s1836_s22, 3  ;;  %p156_p8 = scmp.eq.s32.totalorder %s1262_s23, 3 }
  0x10   : > { %p1263_p9 = scmp.ge.s32.totalorder %s1771_s21, 1  ;;  %p163_p10 = scmp.lt.s32.totalorder %s1771_s21, 5 }
  0x11   : > { %p1867_p11 = por %p150_p7, %p36_p0  ;;  %p1871_p12 = por %p156_p8, %p42_p3 }
  0x12   : > { %p1875_p13 = pnand %p1263_p9, %p163_p10  ;;  %s2296_s1 = sld [smem:[#allocation12_spill]] }
  0x13   : > { %s2294_s6 = scalar_select %p1871_p12, 1, 0 }
  0x14   : > { %p1532_p1 = pneg %p1875_p13  ;;  %s1773_s11 = smov [#allocation5]  }
  0x15   : > { %s176_s12 = sshll.u32 %s1773_s11, 4  ;;  %s191_s15 = sshll.u32 %s2285_s3, 4  ;;  %s177_s12 = int_to_ptr.vmem [resolvable:$true] %s176_s12  ;;  %s192_s15 = int_to_ptr.hbm [resolvable:$true] %s191_s15 }
  0x16   : > { %p1533_p0 = pnand %p1532_p1, %p2289_p4  ;;  %s1774_s16 = smov 64  }
  0x17   : > { %s1775_s17 = smov 4   ;;  %s1776_s23 = smov [#allocation7]  }
  0x18   : > { %s174_s10 = sshll.u32 %s2296_s1, 4  ;;  %s193_s25 = sshll.u32 %s1776_s23, 4  ;;  %s175_s10 = int_to_ptr.hbm [resolvable:$true] %s174_s10  ;;  %s194_s25 = int_to_ptr.vmem [resolvable:$true] %s193_s25 }
  0x19   : > { %1535 = dma.hbm_to_vmem [thread:$0]  (!%p1533_p0), %s175_s10, 2048, %s177_s12, [#allocation6], %s1774_s16, %s1774_s16, %s1775_s17  }
  0x1a   : > { %s1777_s26 = smov 128   ;;  %s1778_s8 = smov 8  }
  0x1b   : > { %1538 = dma.hbm_to_vmem [thread:$0]  (!%p1533_p0), %s192_s15, 2048, %s194_s25, [#allocation6], %s1777_s26, %s1777_s26, %s1778_s8  }
  0x1c   : > { %p1266_p2 = scmp.ge.s32.totalorder %s1771_s21, 4 }
  0x1e   : > { %206 = sbr.rel (%p1266_p2) target bundleno = 72 (0x48), region = 32 }
  0x23   : > { %209 = sbr.rel (!%p1854_p5) target bundleno = 72 (0x48), region = 36  ;;  %s210_s9 = sand.u32 (%p1854_p5), 1, %s1767_s20  }
  0x24   : > { %s1268_s11 = sshll.u32 (%p1854_p5), %s1771_s21, 5  ;;  %s1267_s13 = sshll.u32 (%p1854_p5), %s210_s9, 9 }
  0x25   : > { %s216_s14 = ssub.s32 (%p1854_p5), 125, %s1268_s11  ;;  %s1897_s15 = scalar_lea.sflag (%p1854_p5), [#allocation3], %s210_s9 }
  0x26   : > { %p217_p3 = scmp.lt.s32.totalorder (%p1854_p5), %s216_s14, 32  ;;  %s214_s17 = scalar_lea.vmem (%p1854_p5), [#allocation2], %s1267_s13 }
  0x28   : > { %s2308_s14 = smov (!%p217_p3, %s216_s14), 32 }
  0x29   : > { %s1484_s10 = sshll.u32 %s2308_s14, 4 }
  0x2a   : > { %s221_s12 = ssub.s32 512, %s1484_s10 }
  0x2b   : > { %s222_s16 = sshll.u32 %s221_s12, 4 }
  0x2c   : > { %223 = vsyncadd %s1897_s15, %s222_s16  ;;  %p1900_p5 = scmp.ne.s32.totalorder %s1484_s10, 0  ;;  %s1486_s23 = sshll.u32 %s1771_s21, 9 }
  0x2d   : > { %s227_s8 = scalar_lea.hbm %s2282_s0, %s1486_s23  ;;  %s1908_s11 = sshll.u32 %s214_s17, 4  ;;  %s232_s11 = int_to_ptr.vmem [resolvable:$true] %s1908_s11 }
  0x2e   : > { %s229_s9 = sshll.u32 %s227_s8, 4  ;;  %s2288_s13 = sshll.u32 %s2308_s14, 8  ;;  %s1911_s9 = int_to_ptr.hbm [resolvable:$true] %s229_s9 }
  0x2f   : > { %s1651_s12 = sshra.s32 %s1911_s9, 4  ;;  %s1653_s10 = sshrl.u32 %s2288_s13, 4  ;;  %s1652_s12 = int_to_ptr.hbm [resolvable:$true] %s1651_s12 }
  0x30   : > { %s1658_s16 = scalar_lea.hbm %s1652_s12, %s1653_s10  ;;  %s1662_s17 = scalar_lea.hbm %s2282_s0, 2000 }
  0x31   : > { %p1659_p7 = scmp.ne.s32.totalorder %s1652_s12, %s1658_s16  ;;  %p1663_p10 = scmp.lt.s32.totalorder %s1652_s12, %s2282_s0 }
  0x32   : > { %p1664_p1 = scmp.lt.s32.totalorder %s1662_s17, %s1658_s16 }
  0x33   : > { %p1660_p8 = pnand %p1659_p7, %p1900_p5 }
  0x34   : > { %p1665_p0 = por %p1664_p1, %p1663_p10 }
  0x35   : > { %p1661_p9 = pneg %p1660_p8 }
  0x37   : > { %p1666_p2 = pnand %p1665_p0, %p1661_p9 }
  0x39   : > { %1669 = shalt.err (!%p1666_p2)
}
  0x3a   : > { %s1670_s13 = sshra.s32 %s232_s11, 4  ;;  %s1779_s25 = smov [#allocation2]   ;;  %s1671_s13 = int_to_ptr.vmem [resolvable:$true] %s1670_s13 }
  0x3b   : > { %s1677_s1 = scalar_lea.vmem %s1671_s13, %s1653_s10  ;;  %s1681_s23 = scalar_lea.vmem %s1779_s25, 1024 }
  0x3c   : > { %p1678_p3 = scmp.ne.s32.totalorder %s1671_s13, %s1677_s1  ;;  %p1683_p4 = scmp.lt.s32.totalorder %s1681_s23, %s1677_s1 }
  0x3e   : > { %p1679_p7 = pnand %p1678_p3, %p1900_p5 }
  0x40   : > { %p1680_p8 = pneg %p1679_p7 }
  0x42   : > { %p1685_p12 = pnand %p1683_p4, %p1680_p8 }
  0x44   : > { %1688 = shalt.err (!%p1685_p12)
}
  0x45   : > { %s1780_s12 = smov 256   ;;  %s1781_s16 = smov 16  }
  0x46   : > { %s2298_s17 = sshll.u32 %s2308_s14, 8 }
  0x47   : > { %237 = dma.hbm_to_vmem [thread:$0]  (%p1900_p5), %s1911_s9, %s2298_s17, %s232_s11, %s1897_s15, %s1780_s12, %s1780_s12, %s1781_s16  }
  0x48 PF: > { %243 = sbr.rel (%p1875_p13) target bundleno = 670 (0x29e), region = 40  ;;  %s1940_s1 = sand.u32 (!%p1875_p13), 1, %s1763_s19  }
  0x49   : > { %s1277_s13 = sshll.u32 (!%p1875_p13), %s1940_s1, 9  ;;  %s246_s10 = scalar_lea.sflag (!%p1875_p13), [#allocation3], %s1940_s1 }
  0x4a   : > { %s1946_s26 = scalar_lea.vmem (!%p1875_p13), [#allocation2], %s1277_s13 }
  0x4d   : > { %1746 = dma.done.wait (%p1860_p6), %s246_s10, 8192  }
  0x4e   : > { %1748 = vsyncadd (%p1860_p6), %s246_s10, 4294959104  ;;  %p2299_p4 = scmp.eq.s32.totalorder %s1836_s22, 0 }
  0x50   : > { %1750 = dma.done.wait (%p2299_p4), [#allocation6], 4096   ;;  %p2300_p12 = pmov %p2299_p4 }
  0x51   : > { %v1494_v0 = vld [vmem:[#allocation5 + $0x38] sm:$0xff]  ;;  %v1493_v2 = vld [vmem:[#allocation5 + $0x30] sm:$0xff]  ;;  %v1492_v4 = vld [vmem:[#allocation5 + $0x28] sm:$0xff]  ;;  %s2079_s28 = scalar_lea.vmem [#allocation8], %s1277_s13  ;;  %s1144_s11 = scalar_lea.sflag [#allocation4], %s1940_s1 }
  0x52   : > { %1752 = vsyncadd (%p2300_p12), [#allocation6], 4294963200  ;;  %v1502_v1 = vld [vmem:[#allocation5 + $0x78] sm:$0xff]  ;;  %499 = vmatpush.bf16.msra.mxu0 %v1494_v0  ;;  %v1501_v3 = vld [vmem:[#allocation5 + $0x70] sm:$0xff]  ;;  %s1474_s9 = sshll.u32 (%p1867_p11), %s1836_s22, 5 }
  0x53   : > { %548 = vmatpush.bf16.msra.mxu1 %v1502_v1  ;;  %v1500_v5 = vld [vmem:[#allocation5 + $0x68] sm:$0xff]  ;;  %v1491_v6 = vld [vmem:[#allocation5 + $0x20] sm:$0xff]  ;;  %v1490_v8 = vld [vmem:[#allocation5 + $0x18] sm:$0xff]  ;;  %s1152_s8 = ssub.s32 (%p1867_p11), 125, %s1474_s9 }
  0x54   : > { %v1499_v7 = vld [vmem:[#allocation5 + $0x60] sm:$0xff]  ;;  %v1498_v9 = vld [vmem:[#allocation5 + $0x58] sm:$0xff]  ;;  %v1489_v10 = vld [vmem:[#allocation5 + $0x10] sm:$0xff]  ;;  %p1153_p6 = scmp.lt.s32.totalorder (%p1867_p11), %s1152_s8, 32 }
  0x55   : > { %v1497_v11 = vld [vmem:[#allocation5 + $0x50] sm:$0xff]  ;;  %v1488_v12 = vld [vmem:[#allocation5 + $0x8] sm:$0xff]  ;;  %v1487_v14 = vld [vmem:[#allocation5] sm:$0xff] }
  0x56   : > { %500 = vmatpush.bf16.msra.mxu0 %v1493_v2  ;;  %v1496_v13 = vld [vmem:[#allocation5 + $0x48] sm:$0xff]  ;;  %v1495_v15 = vld [vmem:[#allocation5 + $0x40] sm:$0xff]  ;;  %v354_v17 = vld [vmem:[%s1946_s26 + $0x10] sm:$0xff] }
  0x57   : > { %549 = vmatpush.bf16.msra.mxu1 %v1501_v3  ;;  %v352_v16 = vld [vmem:[%s1946_s26] sm:$0xff]  ;;  %v353_v18 = vld [vmem:[%s1946_s26 + $0x8] sm:$0xff]  ;;  %v355_v19 = vld [vmem:[%s1946_s26 + $0x18] sm:$0xff] }
  0x58   : > { %v384_v20 = vpack.c.bf16 %v354_v17, %v352_v16  ;;  %v385_v21 = vpack.c.bf16 %v355_v19, %v353_v18  ;;  %v356_v22 = vld [vmem:[%s1946_s26 + $0x20] sm:$0xff]  ;;  %v358_v23 = vld [vmem:[%s1946_s26 + $0x30] sm:$0xff]  ;;  %v357_v24 = vld [vmem:[%s1946_s26 + $0x28] sm:$0xff] }
  0x59   : > { %v359_v25 = vld [vmem:[%s1946_s26 + $0x38] sm:$0xff]  ;;  %v386_v26 = vpack.c.bf16 %v358_v23, %v356_v22  ;;  %v360_v28 = vld [vmem:[%s1946_s26 + $0x40] sm:$0xff]  ;;  %v362_v29 = vld [vmem:[%s1946_s26 + $0x50] sm:$0xff] }
  0x5a   : > { %501 = vmatpush.bf16.msra.mxu0 %v1492_v4  ;;  %v387_v27 = vpack.c.bf16 %v359_v25, %v357_v24  ;;  %v361_v30 = vld [vmem:[%s1946_s26 + $0x48] sm:$0xff]  ;;  %v363_v31 = vld [vmem:[%s1946_s26 + $0x58] sm:$0xff]  ;;  %v388_v32 = vpack.c.bf16 %v362_v29, %v360_v28  ;;  %v364_v34 = vld [vmem:[%s1946_s26 + $0x60] sm:$0xff] }
  0x5b   : > { %550 = vmatpush.bf16.msra.mxu1 %v1500_v5  ;;  %v389_v33 = vpack.c.bf16 %v363_v31, %v361_v30  ;;  %v366_v35 = vld [vmem:[%s1946_s26 + $0x70] sm:$0xff]  ;;  %v365_v36 = vld [vmem:[%s1946_s26 + $0x68] sm:$0xff]  ;;  %v367_v37 = vld [vmem:[%s1946_s26 + $0x78] sm:$0xff] }
  0x5c   : > { %v390_v38 = vpack.c.bf16 %v366_v35, %v364_v34  ;;  %v391_v39 = vpack.c.bf16 %v367_v37, %v365_v36  ;;  %v368_v40 = vld [vmem:[%s1946_s26 + $0x80] sm:$0xff]  ;;  %v370_v41 = vld [vmem:[%s1946_s26 + $0x90] sm:$0xff]  ;;  %v369_v42 = vld [vmem:[%s1946_s26 + $0x88] sm:$0xff] }
  0x5d   : > { %v371_v43 = vld [vmem:[%s1946_s26 + $0x98] sm:$0xff]  ;;  %v392_v44 = vpack.c.bf16 %v370_v41, %v368_v40  ;;  %v1403_v46 = vld [vmem:[#allocation7 + $0x70] sm:$0xf]  ;;  %v1517_v48 = vld [vmem:[#allocation7 + $0x74] sm:$0xf] }
  0x5e   : > { %502 = vmatpush.bf16.msra.mxu0 %v1491_v6  ;;  %v393_v45 = vpack.c.bf16 %v371_v43, %v369_v42  ;;  %v1518_v47 = vld [vmem:[#allocation7 + $0x74] sm:$0xf0]  ;;  %v1405_v50 = vld [vmem:[#allocation7 + $0x78] sm:$0xf0]  ;;  %v372_v52 = vld [vmem:[%s1946_s26 + $0xa0] sm:$0xff] }
  0x5f   : > { %551 = vmatpush.bf16.msra.mxu1 %v1499_v7  ;;  %v1976_v49 = vor.u32 %v1518_v47, %v1403_v46  ;;  %v1978_v51 = vor.u32 %v1517_v48, %v1405_v50  ;;  %v374_v53 = vld [vmem:[%s1946_s26 + $0xb0] sm:$0xff]  ;;  %v373_v54 = vld [vmem:[%s1946_s26 + $0xa8] sm:$0xff]  ;;  %v375_v55 = vld [vmem:[%s1946_s26 + $0xb8] sm:$0xff] }
  0x60   : > { %v394_v56 = vpack.c.bf16 %v374_v53, %v372_v52  ;;  %v395_v57 = vpack.c.bf16 %v375_v55, %v373_v54  ;;  %v1395_v58 = vld [vmem:[#allocation7 + $0x60] sm:$0xf]  ;;  %v1516_v59 = vld [vmem:[#allocation7 + $0x64] sm:$0xf0]  ;;  %v1515_v60 = vld [vmem:[#allocation7 + $0x64] sm:$0xf] }
  0x61   : > { %706 = vmatpush.bf16.msra.mxu2 %v1976_v49  ;;  %755 = vmatpush.bf16.msra.mxu3 %v1978_v51  ;;  %v1986_v61 = vor.u32 %v1516_v59, %v1395_v58  ;;  %v1397_v62 = vld [vmem:[#allocation7 + $0x68] sm:$0xf0]  ;;  %v1387_v63 = vld [vmem:[#allocation7 + $0x50] sm:$0xf]  ;;  %v1510_v19 = vld [vmem:[#allocation7 + $0x34] sm:$0xf0] }
  0x62   : > { %503 = vmatpush.bf16.msra.mxu0 %v1490_v8  ;;  %v1371_v18 = vld [vmem:[#allocation7 + $0x30] sm:$0xf]  ;;  %v1373_v22 = vld [vmem:[#allocation7 + $0x38] sm:$0xf0]  ;;  %v1363_v24 = vld [vmem:[#allocation7 + $0x20] sm:$0xf] }
  0x63   : > { %552 = vmatpush.bf16.msra.mxu1 %v1498_v9  ;;  %v1508_v25 = vld [vmem:[#allocation7 + $0x24] sm:$0xf0]  ;;  %v1365_v28 = vld [vmem:[#allocation7 + $0x28] sm:$0xf0]  ;;  %v1355_v30 = vld [vmem:[#allocation7 + $0x10] sm:$0xf] }
  0x64   : > { %v1506_v31 = vld [vmem:[#allocation7 + $0x14] sm:$0xf0]  ;;  %v1357_v34 = vld [vmem:[#allocation7 + $0x18] sm:$0xf0]  ;;  %v380_v36 = vld [vmem:[%s1946_s26 + $0xe0] sm:$0xff] }
  0x65   : > { %707 = vmatpush.bf16.msra.mxu2 %v1986_v61  ;;  %v382_v37 = vld [vmem:[%s1946_s26 + $0xf0] sm:$0xff]  ;;  %v1503_v40 = vld [vmem:[#allocation7 + $0x4] sm:$0xf]  ;;  %v381_v41 = vld [vmem:[%s1946_s26 + $0xe8] sm:$0xff] }
  0x66   : > { %504 = vmatpush.bf16.msra.mxu0 %v1489_v10  ;;  %v383_v42 = vld [vmem:[%s1946_s26 + $0xf8] sm:$0xff]  ;;  %v398_v46 = vpack.c.bf16 %v382_v37, %v380_v36  ;;  %v1409_v48 = vld [vmem:[%s1946_s26 + $0x100] sm:$0xff]  ;;  %v1411_v50 = vld [vmem:[%s1946_s26 + $0x110] sm:$0xff] }
  0x67   : > { %553 = vmatpush.bf16.msra.mxu1 %v1497_v11  ;;  %v399_v47 = vpack.c.bf16 %v383_v42, %v381_v41  ;;  %v1410_v52 = vld [vmem:[%s1946_s26 + $0x108] sm:$0xff]  ;;  %v1412_v53 = vld [vmem:[%s1946_s26 + $0x118] sm:$0xff] }
  0x68   : > { %v874_v54 = vpack.c.bf16 %v1412_v53, %v1410_v52  ;;  %v1424_v36 = vld [vmem:[%s1946_s26 + $0x178] sm:$0xff]  ;;  %v1425_v52 = vld [vmem:[%s1946_s26 + $0x180] sm:$0xff]  ;;  %v1427_v53 = vld [vmem:[%s1946_s26 + $0x190] sm:$0xff] }
  0x6a   : > { %505 = vmatpush.bf16.msra.mxu0 %v1488_v12 }
  0x6b   : > { %554 = vmatpush.bf16.msra.mxu1 %v1496_v13 }
  0x6e   : > { %506 = vmatpush.bf16.msra.mxu0 %v1487_v14 }
  0x6f   : > { %555 = vmatpush.bf16.msra.mxu1 %v1495_v15 }
  0x71   : > { %507 = vmatmul.bf16.vlgmr.msra.gmra.mxu0 %v384_v20  ;;  %v1509_v20 = vld [vmem:[#allocation7 + $0x34] sm:$0xf] }
  0x72   : > { %889 = vmatpush.bf16.msrb.mxu0 %v1494_v0  ;;  %556 = vmatmul.bf16.vlgmr.msra.gmra.mxu1 %v385_v21  ;;  %v1514_v0 = vld [vmem:[#allocation7 + $0x54] sm:$0xf0]  ;;  %v1372_v21 = vor.u32 %v1510_v19, %v1371_v18  ;;  %v1376_v23 = vor.u32 %v1509_v20, %v1373_v22  ;;  %v1418_v18 = vld [vmem:[%s1946_s26 + $0x148] sm:$0xff] }
  0x73   : > { %938 = vmatpush.bf16.msrb.mxu1 %v1502_v1  ;;  %v1988_v1 = vor.u32 %v1515_v60, %v1397_v62  ;;  %v1420_v19 = vld [vmem:[%s1946_s26 + $0x158] sm:$0xff] }
  0x75   : > { %756 = vmatpush.bf16.msra.mxu3 %v1988_v1 }
  0x76   : > { %890 = vmatpush.bf16.msrb.mxu0 %v1493_v2  ;;  %v1513_v2 = vld [vmem:[#allocation7 + $0x54] sm:$0xf] }
  0x77   : > { %939 = vmatpush.bf16.msrb.mxu1 %v1501_v3  ;;  %v1389_v3 = vld [vmem:[#allocation7 + $0x58] sm:$0xf0] }
  0x7a   : > { %891 = vmatpush.bf16.msrb.mxu0 %v1492_v4  ;;  %v1991_v4 = vor.u32 %v1514_v0, %v1387_v63  ;;  %v1413_v63 = vld [vmem:[%s1946_s26 + $0x120] sm:$0xff]  ;;  %v1415_v0 = vld [vmem:[%s1946_s26 + $0x130] sm:$0xff] }
  0x7b   : > { %940 = vmatpush.bf16.msrb.mxu1 %v1500_v5  ;;  %v1994_v5 = vor.u32 %v1513_v2, %v1389_v3  ;;  %v1416_v2 = vld [vmem:[%s1946_s26 + $0x138] sm:$0xff] }
  0x7c   : > { %708 = vmatpush.bf16.msra.mxu2 %v1991_v4 }
  0x7d   : > { %757 = vmatpush.bf16.msra.mxu3 %v1994_v5 }
  0x7e   : > { %892 = vmatpush.bf16.msrb.mxu0 %v1491_v6  ;;  %v1379_v6 = vld [vmem:[#allocation7 + $0x40] sm:$0xf] }
  0x7f   : > { %941 = vmatpush.bf16.msrb.mxu1 %v1499_v7  ;;  %v1512_v7 = vld [vmem:[#allocation7 + $0x44] sm:$0xf0] }
  0x81   : > { %512 = vmatmul.bf16.gmra.mxu0 %v386_v26  ;;  %v1507_v26 = vld [vmem:[#allocation7 + $0x24] sm:$0xf] }
  0x82   : > { %893 = vmatpush.bf16.msrb.mxu0 %v1490_v8  ;;  %561 = vmatmul.bf16.gmra.mxu1 %v387_v27  ;;  %v1511_v8 = vld [vmem:[#allocation7 + $0x44] sm:$0xf]  ;;  %v1364_v27 = vor.u32 %v1508_v25, %v1363_v24  ;;  %v1368_v29 = vor.u32 %v1507_v26, %v1365_v28  ;;  %v878_v24 = vpack.c.bf16 %v1420_v19, %v1418_v18 }
  0x83   : > { %942 = vmatpush.bf16.msrb.mxu1 %v1498_v9  ;;  %v1381_v9 = vld [vmem:[#allocation7 + $0x48] sm:$0xf0] }
  0x86   : > { %894 = vmatpush.bf16.msrb.mxu0 %v1489_v10  ;;  %v1380_v10 = vor.u32 %v1512_v7, %v1379_v6  ;;  %v875_v6 = vpack.c.bf16 %v1415_v0, %v1413_v63 }
  0x87   : > { %943 = vmatpush.bf16.msrb.mxu1 %v1497_v11  ;;  %v376_v11 = vld [vmem:[%s1946_s26 + $0xc0] sm:$0xff] }
  0x88   : > { %709 = vmatpush.bf16.msra.mxu2 %v1380_v10 }
  0x8a   : > { %895 = vmatpush.bf16.msrb.mxu0 %v1488_v12  ;;  %v1384_v12 = vor.u32 %v1511_v8, %v1381_v9 }
  0x8b   : > { %944 = vmatpush.bf16.msrb.mxu1 %v1496_v13  ;;  %v378_v13 = vld [vmem:[%s1946_s26 + $0xd0] sm:$0xff] }
  0x8c   : > { %v396_v16 = vpack.c.bf16 %v378_v13, %v376_v11  ;;  %758 = vmatpush.bf16.msra.mxu3 %v1384_v12  ;;  %710 = vmatpush.bf16.msra.mxu2 %v1372_v21 }
  0x8e   : > { %896 = vmatpush.bf16.msrb.mxu0 %v1487_v14  ;;  %v377_v14 = vld [vmem:[%s1946_s26 + $0xc8] sm:$0xff] }
  0x8f   : > { %945 = vmatpush.bf16.msrb.mxu1 %v1495_v15  ;;  %v379_v15 = vld [vmem:[%s1946_s26 + $0xd8] sm:$0xff] }
  0x90   : > { %v397_v17 = vpack.c.bf16 %v379_v15, %v377_v14  ;;  %759 = vmatpush.bf16.msra.mxu3 %v1376_v23  ;;  %711 = vmatpush.bf16.msra.mxu2 %v1364_v27 }
  0x91   : > { %517 = vmatmul.bf16.gmra.mxu0 %v388_v32  ;;  %v1505_v32 = vld [vmem:[#allocation7 + $0x14] sm:$0xf] }
  0x92   : > { %566 = vmatmul.bf16.gmra.mxu1 %v389_v33  ;;  %v1356_v33 = vor.u32 %v1506_v31, %v1355_v30  ;;  %v1360_v35 = vor.u32 %v1505_v32, %v1357_v34  ;;  %v1423_v34 = vld [vmem:[%s1946_s26 + $0x170] sm:$0xff] }
  0x94   : > { %760 = vmatpush.bf16.msra.mxu3 %v1368_v29  ;;  %712 = vmatpush.bf16.msra.mxu2 %v1356_v33 }
  0x98   : > { %761 = vmatpush.bf16.msra.mxu3 %v1360_v35 }
  0xa1   : > { %522 = vmatmul.bf16.gmra.mxu0 %v390_v38  ;;  %v1347_v38 = vld [vmem:[#allocation7] sm:$0xf] }
  0xa2   : > { %571 = vmatmul.bf16.gmra.mxu1 %v391_v39  ;;  %v1504_v39 = vld [vmem:[#allocation7 + $0x4] sm:$0xf0] }
  0xa3   : > { %v1348_v43 = vor.u32 %v1504_v39, %v1347_v38 }
  0xa5   : > { %713 = vmatpush.bf16.msra.mxu2 %v1348_v43 }
  0xa9   : > { %1011 = vmatpush.bf16.msrb.mxu2 %v1976_v49  ;;  %v873_v49 = vpack.c.bf16 %v1411_v50, %v1409_v48 }
  0xad   : > { %1012 = vmatpush.bf16.msrb.mxu2 %v1986_v61 }
  0xb1   : > { %527 = vmatmul.bf16.gmra.mxu0 %v392_v44  ;;  %v1349_v44 = vld [vmem:[#allocation7 + $0x8] sm:$0xf0]  ;;  %1013 = vmatpush.bf16.msrb.mxu2 %v1991_v4 }
  0xb2   : > { %576 = vmatmul.bf16.gmra.mxu1 %v393_v45  ;;  %v1352_v45 = vor.u32 %v1503_v40, %v1349_v44 }
  0xb4   : > { %762 = vmatpush.bf16.msra.mxu3 %v1352_v45 }
  0xb5   : > { %1014 = vmatpush.bf16.msrb.mxu2 %v1380_v10 }
  0xb8   : > { %1060 = vmatpush.bf16.msrb.mxu3 %v1978_v51 }
  0xb9   : > { %1015 = vmatpush.bf16.msrb.mxu2 %v1372_v21 }
  0xbc   : > { %1061 = vmatpush.bf16.msrb.mxu3 %v1988_v1  ;;  %v1414_v1 = vld [vmem:[%s1946_s26 + $0x128] sm:$0xff] }
  0xbd   : > { %1016 = vmatpush.bf16.msrb.mxu2 %v1364_v27  ;;  %v876_v7 = vpack.c.bf16 %v1416_v2, %v1414_v1 }
  0xc0   : > { %1062 = vmatpush.bf16.msrb.mxu3 %v1994_v5 }
  0xc1   : > { %532 = vmatmul.bf16.gmra.mxu0 %v394_v56  ;;  %v2019_v56 = vld [vmem:[%s2284_s2] ss:$0 sm:$0xff]  ;;  %1017 = vmatpush.bf16.msrb.mxu2 %v1356_v33 }
  0xc2   : > { %581 = vmatmul.bf16.gmra.mxu1 %v395_v57  ;;  %v1421_v33 = vld [vmem:[%s1946_s26 + $0x160] sm:$0xff] }
  0xc3   : > { %v879_v40 = vpack.c.bf16 %v1423_v34, %v1421_v33 }
  0xc4   : > { %1063 = vmatpush.bf16.msrb.mxu3 %v1384_v12 }
  0xc5   : > { %1018 = vmatpush.bf16.msrb.mxu2 %v1348_v43 }
  0xc8   : > { %1064 = vmatpush.bf16.msrb.mxu3 %v1376_v23 }
  0xcc   : > { %1065 = vmatpush.bf16.msrb.mxu3 %v1368_v29 }
  0xd0   : > { %1066 = vmatpush.bf16.msrb.mxu3 %v1360_v35  ;;  %v1422_v35 = vld [vmem:[%s1946_s26 + $0x168] sm:$0xff] }
  0xd1   : > { %537 = vmatmul.bf16.gmra.mxu0 %v396_v16  ;;  %v1417_v16 = vld [vmem:[%s1946_s26 + $0x140] sm:$0xff]  ;;  %v880_v41 = vpack.c.bf16 %v1424_v36, %v1422_v35 }
  0xd2   : > { %586 = vmatmul.bf16.gmra.mxu1 %v397_v17  ;;  %v1419_v17 = vld [vmem:[%s1946_s26 + $0x150] sm:$0xff] }
  0xd3   : > { %v877_v23 = vpack.c.bf16 %v1419_v17, %v1417_v16 }
  0xd4   : > { %1067 = vmatpush.bf16.msrb.mxu3 %v1352_v45 }
  0xe1   : > { %542 = vmatmul.bf16.gmra.mxu0 %v398_v46 }
  0xe2   : > { %591 = vmatmul.bf16.gmra.mxu1 %v399_v47 }
  0xee   : > { %v508_v55 = vpop.f32.mrf.mxu0 }
  0xef   : > { %v557_v51 = vpop.f32.mrf.mxu1  ;;  %v509_v57 = vadd.f32 %v2019_v56, %v508_v55 }
  0xf1   : > { %897 = vmatmul.bf16.vlgmr.msrb.gmra.mxu0 %v873_v49  ;;  %v558_v60 = vadd.f32 %v557_v51, %v509_v57  ;;  %v1426_v49 = vld [vmem:[%s1946_s26 + $0x188] sm:$0xff] }
  0xf2   : > { %946 = vmatmul.bf16.vlgmr.msrb.gmra.mxu1 %v874_v54  ;;  %v1428_v54 = vld [vmem:[%s1946_s26 + $0x198] sm:$0xff] }
  0xf3   : > { %v597_v3 = vmax.f32 %v558_v60, 0.0 }
  0xf6   : > { %v510_v58 = vpop.f32.mrf.mxu0 }
  0xf7   : > { %v559_v59 = vpop.f32.mrf.mxu1  ;;  %v511_v61 = vadd.f32 %v2019_v56, %v510_v58  ;;  %v881_v58 = vpack.c.bf16 %v1427_v53, %v1425_v52 }
  0xf9   : > { %v560_v62 = vadd.f32 %v559_v59, %v511_v61  ;;  %v882_v59 = vpack.c.bf16 %v1428_v54, %v1426_v49 }
  0xfb   : > { %v598_v4 = vmax.f32 %v560_v62, 0.0 }
  0xfd   : > { %v613_v5 = vpack.c.bf16 %v598_v4, %v597_v3  ;;  %v1429_v4 = vld [vmem:[%s1946_s26 + $0x1a0] sm:$0xff] }
  0xfe   : > { %v513_v8 = vpop.f32.mrf.mxu0 }
  0xff   : > { %v562_v9 = vpop.f32.mrf.mxu1  ;;  %714 = vmatmul.bf16.vlgmr.msra.gmra.mxu2 %v613_v5  ;;  %763 = vmatmul.bf16.vlgmr.msra.gmra.mxu3 %v613_v5  ;;  %v514_v10 = vadd.f32 %v2019_v56, %v513_v8  ;;  %v1431_v5 = vld [vmem:[%s1946_s26 + $0x1b0] sm:$0xff] }
 0x101   : > { %902 = vmatmul.bf16.gmra.mxu0 %v875_v6  ;;  %v563_v13 = vadd.f32 %v562_v9, %v514_v10  ;;  %v1430_v6 = vld [vmem:[%s1946_s26 + $0x1a8] sm:$0xff] }
 0x102   : > { %951 = vmatmul.bf16.gmra.mxu1 %v876_v7  ;;  %v1432_v7 = vld [vmem:[%s1946_s26 + $0x1b8] sm:$0xff] }
 0x103   : > { %v599_v20 = vmax.f32 %v563_v13, 0.0 }
 0x106   : > { %v515_v11 = vpop.f32.mrf.mxu0 }
 0x107   : > { %v564_v12 = vpop.f32.mrf.mxu1  ;;  %v516_v14 = vadd.f32 %v2019_v56, %v515_v11  ;;  %v883_v11 = vpack.c.bf16 %v1431_v5, %v1429_v4  ;;  %v348_v5 = vld [vmem:[%s2286_s4] sm:$0x3] }
 0x109   : > { %v565_v15 = vadd.f32 %v564_v12, %v516_v14  ;;  %v884_v12 = vpack.c.bf16 %v1432_v7, %v1430_v6 }
 0x10b   : > { %v600_v21 = vmax.f32 %v565_v15, 0.0 }
 0x10d   : > { %v614_v22 = vpack.c.bf16 %v600_v21, %v599_v20  ;;  %v1433_v21 = vld [vmem:[%s1946_s26 + $0x1c0] sm:$0xff] }
 0x10e   : > { %v518_v25 = vpop.f32.mrf.mxu0 }
 0x10f   : > { %v567_v26 = vpop.f32.mrf.mxu1  ;;  %719 = vmatmul.bf16.gmra.mxu2 %v614_v22  ;;  %768 = vmatmul.bf16.gmra.mxu3 %v614_v22  ;;  %v519_v27 = vadd.f32 %v2019_v56, %v518_v25  ;;  %v1435_v22 = vld [vmem:[%s1946_s26 + $0x1d0] sm:$0xff] }
 0x111   : > { %907 = vmatmul.bf16.gmra.mxu0 %v877_v23  ;;  %v568_v30 = vadd.f32 %v567_v26, %v519_v27  ;;  %v1434_v23 = vld [vmem:[%s1946_s26 + $0x1c8] sm:$0xff] }
 0x112   : > { %956 = vmatmul.bf16.gmra.mxu1 %v878_v24  ;;  %v1436_v24 = vld [vmem:[%s1946_s26 + $0x1d8] sm:$0xff] }
 0x113   : > { %v601_v37 = vmax.f32 %v568_v30, 0.0 }
 0x116   : > { %v520_v28 = vpop.f32.mrf.mxu0 }
 0x117   : > { %v569_v29 = vpop.f32.mrf.mxu1  ;;  %v521_v31 = vadd.f32 %v2019_v56, %v520_v28  ;;  %v885_v28 = vpack.c.bf16 %v1435_v22, %v1433_v21 }
 0x119   : > { %v570_v32 = vadd.f32 %v569_v29, %v521_v31  ;;  %v886_v29 = vpack.c.bf16 %v1436_v24, %v1434_v23 }
 0x11b   : > { %v602_v38 = vmax.f32 %v570_v32, 0.0 }
 0x11d   : > { %v615_v39 = vpack.c.bf16 %v602_v38, %v601_v37  ;;  %v1437_v38 = vld [vmem:[%s1946_s26 + $0x1e0] sm:$0xff] }
 0x11e   : > { %v523_v42 = vpop.f32.mrf.mxu0 }
 0x11f   : > { %v572_v43 = vpop.f32.mrf.mxu1  ;;  %724 = vmatmul.bf16.gmra.mxu2 %v615_v39  ;;  %773 = vmatmul.bf16.gmra.mxu3 %v615_v39  ;;  %v524_v44 = vadd.f32 %v2019_v56, %v523_v42  ;;  %v1439_v39 = vld [vmem:[%s1946_s26 + $0x1f0] sm:$0xff] }
 0x121   : > { %912 = vmatmul.bf16.gmra.mxu0 %v879_v40  ;;  %v573_v47 = vadd.f32 %v572_v43, %v524_v44  ;;  %v1438_v40 = vld [vmem:[%s1946_s26 + $0x1e8] sm:$0xff] }
 0x122   : > { %961 = vmatmul.bf16.gmra.mxu1 %v880_v41  ;;  %v1440_v41 = vld [vmem:[%s1946_s26 + $0x1f8] sm:$0xff] }
 0x123   : > { %v603_v55 = vmax.f32 %v573_v47, 0.0 }
 0x126   : > { %v525_v45 = vpop.f32.mrf.mxu0 }
 0x127   : > { %v574_v46 = vpop.f32.mrf.mxu1  ;;  %v526_v48 = vadd.f32 %v2019_v56, %v525_v45  ;;  %v887_v45 = vpack.c.bf16 %v1439_v39, %v1437_v38 }
 0x129   : > { %v575_v50 = vadd.f32 %v574_v46, %v526_v48  ;;  %v888_v46 = vpack.c.bf16 %v1440_v41, %v1438_v40 }
 0x12b   : > { %v604_v51 = vmax.f32 %v575_v50, 0.0 }
 0x12d   : > { %v616_v57 = vpack.c.bf16 %v604_v51, %v603_v55 }
 0x12e   : > { %v528_v60 = vpop.f32.mrf.mxu0 }
 0x12f   : > { %v577_v61 = vpop.f32.mrf.mxu1  ;;  %729 = vmatmul.bf16.gmra.mxu2 %v616_v57  ;;  %778 = vmatmul.bf16.gmra.mxu3 %v616_v57  ;;  %v529_v62 = vadd.f32 %v2019_v56, %v528_v60 }
 0x131   : > { %917 = vmatmul.bf16.gmra.mxu0 %v881_v58  ;;  %v578_v1 = vadd.f32 %v577_v61, %v529_v62 }
 0x132   : > { %966 = vmatmul.bf16.gmra.mxu1 %v882_v59 }
 0x133   : > { %v605_v8 = vmax.f32 %v578_v1, 0.0 }
 0x136   : > { %v530_v63 = vpop.f32.mrf.mxu0 }
 0x137   : > { %v579_v0 = vpop.f32.mrf.mxu1  ;;  %v531_v2 = vadd.f32 %v2019_v56, %v530_v63 }
 0x139   : > { %v580_v3 = vadd.f32 %v579_v0, %v531_v2 }
 0x13b   : > { %v606_v9 = vmax.f32 %v580_v3, 0.0 }
 0x13d   : > { %v617_v10 = vpack.c.bf16 %v606_v9, %v605_v8  ;;  %v2070_v9 = vperm.slane %v348_v5, 0 }
 0x13e   : > { %v533_v13 = vpop.f32.mrf.mxu0 }
 0x13f   : > { %v582_v14 = vpop.f32.mrf.mxu1  ;;  %734 = vmatmul.bf16.gmra.mxu2 %v617_v10  ;;  %783 = vmatmul.bf16.gmra.mxu3 %v617_v10  ;;  %v534_v15 = vadd.f32 %v2019_v56, %v533_v13  ;;  %v2072_v10 = vperm.slane %v348_v5, 1 }
 0x141   : > { %922 = vmatmul.bf16.gmra.mxu0 %v883_v11  ;;  %v583_v18 = vadd.f32 %v582_v14, %v534_v15 }
 0x142   : > { %971 = vmatmul.bf16.gmra.mxu1 %v884_v12 }
 0x143   : > { %v607_v25 = vmax.f32 %v583_v18, 0.0 }
 0x146   : > { %v535_v16 = vpop.f32.mrf.mxu0 }
 0x147   : > { %v584_v17 = vpop.f32.mrf.mxu1  ;;  %v536_v19 = vadd.f32 %v2019_v56, %v535_v16 }
 0x149   : > { %v585_v20 = vadd.f32 %v584_v17, %v536_v19 }
 0x14b   : > { %v608_v26 = vmax.f32 %v585_v20, 0.0 }
 0x14d   : > { %v618_v27 = vpack.c.bf16 %v608_v26, %v607_v25 }
 0x14e   : > { %v538_v30 = vpop.f32.mrf.mxu0 }
 0x14f   : > { %v587_v31 = vpop.f32.mrf.mxu1  ;;  %739 = vmatmul.bf16.gmra.mxu2 %v618_v27  ;;  %788 = vmatmul.bf16.gmra.mxu3 %v618_v27  ;;  %v539_v32 = vadd.f32 %v2019_v56, %v538_v30 }
 0x151   : > { %927 = vmatmul.bf16.gmra.mxu0 %v885_v28  ;;  %v588_v35 = vadd.f32 %v587_v31, %v539_v32 }
 0x152   : > { %976 = vmatmul.bf16.gmra.mxu1 %v886_v29 }
 0x153   : > { %v609_v42 = vmax.f32 %v588_v35, 0.0 }
 0x156   : > { %v540_v33 = vpop.f32.mrf.mxu0 }
 0x157   : > { %v589_v34 = vpop.f32.mrf.mxu1  ;;  %v541_v36 = vadd.f32 %v2019_v56, %v540_v33 }
 0x159   : > { %v590_v37 = vadd.f32 %v589_v34, %v541_v36 }
 0x15b   : > { %v610_v43 = vmax.f32 %v590_v37, 0.0 }
 0x15d   : > { %v619_v44 = vpack.c.bf16 %v610_v43, %v609_v42 }
 0x15e   : > { %v543_v47 = vpop.f32.mrf.mxu0 }
 0x15f   : > { %v592_v48 = vpop.f32.mrf.mxu1  ;;  %744 = vmatmul.bf16.gmra.mxu2 %v619_v44  ;;  %793 = vmatmul.bf16.gmra.mxu3 %v619_v44  ;;  %v544_v50 = vadd.f32 %v2019_v56, %v543_v47 }
 0x161   : > { %932 = vmatmul.bf16.gmra.mxu0 %v887_v45  ;;  %v593_v49 = vadd.f32 %v592_v48, %v544_v50 }
 0x162   : > { %981 = vmatmul.bf16.gmra.mxu1 %v888_v46 }
 0x163   : > { %v611_v51 = vmax.f32 %v593_v49, 0.0 }
 0x166   : > { %v545_v52 = vpop.f32.mrf.mxu0 }
 0x167   : > { %v594_v53 = vpop.f32.mrf.mxu1  ;;  %v546_v54 = vadd.f32 %v2019_v56, %v545_v52 }
 0x169   : > { %v595_v55 = vadd.f32 %v594_v53, %v546_v54 }
 0x16b   : > { %v612_v57 = vmax.f32 %v595_v55, 0.0 }
 0x16d   : > { %v620_v58 = vpack.c.bf16 %v612_v57, %v611_v51 }
 0x16e   : > { %v898_v59 = vpop.f32.mrf.mxu0 }
 0x16f   : > { %v947_v60 = vpop.f32.mrf.mxu1  ;;  %749 = vmatmul.bf16.gmra.mxu2 %v620_v58  ;;  %798 = vmatmul.bf16.gmra.mxu3 %v620_v58  ;;  %v899_v61 = vadd.f32 %v2019_v56, %v898_v59 }
 0x171   : > { %v948_v0 = vadd.f32 %v947_v60, %v899_v61 }
 0x173   : > { %v987_v3 = vmax.f32 %v948_v0, 0.0 }
 0x176   : > { %v900_v62 = vpop.f32.mrf.mxu0 }
 0x177   : > { %v949_v63 = vpop.f32.mrf.mxu1  ;;  %v901_v1 = vadd.f32 %v2019_v56, %v900_v62 }
 0x179   : > { %v950_v2 = vadd.f32 %v949_v63, %v901_v1 }
 0x17b   : > { %v988_v4 = vmax.f32 %v950_v2, 0.0 }
 0x17d   : > { %v1003_v6 = vpack.c.bf16 %v988_v4, %v987_v3 }
 0x17e   : > { %v903_v7 = vpop.f32.mrf.mxu0 }
 0x17f   : > { %v952_v8 = vpop.f32.mrf.mxu1  ;;  %1019 = vmatmul.bf16.vlgmr.msrb.gmra.mxu2 %v1003_v6  ;;  %1068 = vmatmul.bf16.vlgmr.msrb.gmra.mxu3 %v1003_v6  ;;  %v904_v13 = vadd.f32 %v2019_v56, %v903_v7 }
 0x181   : > { %v953_v18 = vadd.f32 %v952_v8, %v904_v13 }
 0x182   : > { %v715_v11 = vpop.f32.mrf.mxu2  ;;  %v764_v12 = vpop.f32.mrf.mxu3 }
 0x183   : > { %v716_v14 = vadd.f32 %v715_v11, %v2070_v9  ;;  %v765_v15 = vadd.f32 %v764_v12, %v2072_v10  ;;  %v989_v23 = vmax.f32 %v953_v18, 0.0 }
 0x185   : > { %806 = vst [vmem:[%s2079_s28] sm:$0xff] %v716_v14 }
 0x186   : > { %807 = vst [vmem:[%s2079_s28 + $0x8] sm:$0xff] %v765_v15  ;;  %v905_v16 = vpop.f32.mrf.mxu0 }
 0x187   : > { %v954_v17 = vpop.f32.mrf.mxu1  ;;  %v906_v19 = vadd.f32 %v2019_v56, %v905_v16 }
 0x189   : > { %v955_v20 = vadd.f32 %v954_v17, %v906_v19 }
 0x18a   : > { %v717_v21 = vpop.f32.mrf.mxu2  ;;  %v766_v22 = vpop.f32.mrf.mxu3 }
 0x18b   : > { %v990_v24 = vmax.f32 %v955_v20, 0.0  ;;  %v718_v25 = vadd.f32 %v717_v21, %v2070_v9  ;;  %v767_v26 = vadd.f32 %v766_v22, %v2072_v10 }
 0x18d   : > { %808 = vst [vmem:[%s2079_s28 + $0x10] sm:$0xff] %v718_v25  ;;  %v1004_v27 = vpack.c.bf16 %v990_v24, %v989_v23 }
 0x18e   : > { %809 = vst [vmem:[%s2079_s28 + $0x18] sm:$0xff] %v767_v26  ;;  %v908_v28 = vpop.f32.mrf.mxu0 }
 0x18f   : > { %v957_v29 = vpop.f32.mrf.mxu1  ;;  %1024 = vmatmul.bf16.gmra.mxu2 %v1004_v27  ;;  %1073 = vmatmul.bf16.gmra.mxu3 %v1004_v27  ;;  %v909_v32 = vadd.f32 %v2019_v56, %v908_v28 }
 0x191   : > { %v958_v37 = vadd.f32 %v957_v29, %v909_v32 }
 0x192   : > { %v720_v30 = vpop.f32.mrf.mxu2  ;;  %v769_v31 = vpop.f32.mrf.mxu3 }
 0x193   : > { %v721_v33 = vadd.f32 %v720_v30, %v2070_v9  ;;  %v770_v34 = vadd.f32 %v769_v31, %v2072_v10  ;;  %v991_v42 = vmax.f32 %v958_v37, 0.0 }
 0x195   : > { %810 = vst [vmem:[%s2079_s28 + $0x20] sm:$0xff] %v721_v33 }
 0x196   : > { %811 = vst [vmem:[%s2079_s28 + $0x28] sm:$0xff] %v770_v34  ;;  %v910_v35 = vpop.f32.mrf.mxu0 }
 0x197   : > { %v959_v36 = vpop.f32.mrf.mxu1  ;;  %v911_v38 = vadd.f32 %v2019_v56, %v910_v35 }
 0x199   : > { %v960_v39 = vadd.f32 %v959_v36, %v911_v38 }
 0x19a   : > { %v722_v40 = vpop.f32.mrf.mxu2  ;;  %v771_v41 = vpop.f32.mrf.mxu3 }
 0x19b   : > { %v992_v43 = vmax.f32 %v960_v39, 0.0  ;;  %v723_v44 = vadd.f32 %v722_v40, %v2070_v9  ;;  %v772_v45 = vadd.f32 %v771_v41, %v2072_v10 }
 0x19d   : > { %812 = vst [vmem:[%s2079_s28 + $0x30] sm:$0xff] %v723_v44  ;;  %v1005_v46 = vpack.c.bf16 %v992_v43, %v991_v42 }
 0x19e   : > { %813 = vst [vmem:[%s2079_s28 + $0x38] sm:$0xff] %v772_v45  ;;  %v913_v47 = vpop.f32.mrf.mxu0 }
 0x19f   : > { %v962_v48 = vpop.f32.mrf.mxu1  ;;  %1029 = vmatmul.bf16.gmra.mxu2 %v1005_v46  ;;  %1078 = vmatmul.bf16.gmra.mxu3 %v1005_v46  ;;  %v914_v53 = vadd.f32 %v2019_v56, %v913_v47 }
 0x1a1   : > { %v963_v57 = vadd.f32 %v962_v48, %v914_v53 }
 0x1a2   : > { %v725_v50 = vpop.f32.mrf.mxu2  ;;  %v774_v52 = vpop.f32.mrf.mxu3 }
 0x1a3   : > { %v726_v49 = vadd.f32 %v725_v50, %v2070_v9  ;;  %v775_v54 = vadd.f32 %v774_v52, %v2072_v10  ;;  %v993_v62 = vmax.f32 %v963_v57, 0.0 }
 0x1a5   : > { %814 = vst [vmem:[%s2079_s28 + $0x40] sm:$0xff] %v726_v49 }
 0x1a6   : > { %815 = vst [vmem:[%s2079_s28 + $0x48] sm:$0xff] %v775_v54  ;;  %v915_v55 = vpop.f32.mrf.mxu0 }
 0x1a7   : > { %v964_v51 = vpop.f32.mrf.mxu1  ;;  %v916_v58 = vadd.f32 %v2019_v56, %v915_v55 }
 0x1a9   : > { %v965_v59 = vadd.f32 %v964_v51, %v916_v58 }
 0x1aa   : > { %v727_v60 = vpop.f32.mrf.mxu2  ;;  %v776_v61 = vpop.f32.mrf.mxu3 }
 0x1ab   : > { %v994_v63 = vmax.f32 %v965_v59, 0.0  ;;  %v728_v0 = vadd.f32 %v727_v60, %v2070_v9  ;;  %v777_v1 = vadd.f32 %v776_v61, %v2072_v10 }
 0x1ad   : > { %816 = vst [vmem:[%s2079_s28 + $0x50] sm:$0xff] %v728_v0  ;;  %v1006_v2 = vpack.c.bf16 %v994_v63, %v993_v62 }
 0x1ae   : > { %817 = vst [vmem:[%s2079_s28 + $0x58] sm:$0xff] %v777_v1  ;;  %v918_v3 = vpop.f32.mrf.mxu0 }
 0x1af   : > { %v967_v4 = vpop.f32.mrf.mxu1  ;;  %1034 = vmatmul.bf16.gmra.mxu2 %v1006_v2  ;;  %1083 = vmatmul.bf16.gmra.mxu3 %v1006_v2  ;;  %v919_v7 = vadd.f32 %v2019_v56, %v918_v3 }
 0x1b1   : > { %v968_v14 = vadd.f32 %v967_v4, %v919_v7 }
 0x1b2   : > { %v730_v5 = vpop.f32.mrf.mxu2  ;;  %v779_v6 = vpop.f32.mrf.mxu3 }
 0x1b3   : > { %v731_v8 = vadd.f32 %v730_v5, %v2070_v9  ;;  %v780_v11 = vadd.f32 %v779_v6, %v2072_v10  ;;  %v995_v19 = vmax.f32 %v968_v14, 0.0 }
 0x1b5   : > { %818 = vst [vmem:[%s2079_s28 + $0x60] sm:$0xff] %v731_v8 }
 0x1b6   : > { %819 = vst [vmem:[%s2079_s28 + $0x68] sm:$0xff] %v780_v11  ;;  %v920_v12 = vpop.f32.mrf.mxu0 }
 0x1b7   : > { %v969_v13 = vpop.f32.mrf.mxu1  ;;  %v921_v15 = vadd.f32 %v2019_v56, %v920_v12 }
 0x1b9   : > { %v970_v16 = vadd.f32 %v969_v13, %v921_v15 }
 0x1ba   : > { %v732_v17 = vpop.f32.mrf.mxu2  ;;  %v781_v18 = vpop.f32.mrf.mxu3 }
 0x1bb   : > { %v996_v20 = vmax.f32 %v970_v16, 0.0  ;;  %v733_v21 = vadd.f32 %v732_v17, %v2070_v9  ;;  %v782_v22 = vadd.f32 %v781_v18, %v2072_v10 }
 0x1bd   : > { %v1007_v23 = vpack.c.bf16 %v996_v20, %v995_v19  ;;  %820 = vst [vmem:[%s2079_s28 + $0x70] sm:$0xff] %v733_v21 }
 0x1be   : > { %821 = vst [vmem:[%s2079_s28 + $0x78] sm:$0xff] %v782_v22  ;;  %v923_v24 = vpop.f32.mrf.mxu0 }
 0x1bf   : > { %v972_v25 = vpop.f32.mrf.mxu1  ;;  %1039 = vmatmul.bf16.gmra.mxu2 %v1007_v23  ;;  %1088 = vmatmul.bf16.gmra.mxu3 %v1007_v23  ;;  %v924_v28 = vadd.f32 %v2019_v56, %v923_v24 }
 0x1c1   : > { %v973_v33 = vadd.f32 %v972_v25, %v924_v28 }
 0x1c2   : > { %v735_v26 = vpop.f32.mrf.mxu2  ;;  %v784_v27 = vpop.f32.mrf.mxu3 }
 0x1c3   : > { %v736_v29 = vadd.f32 %v735_v26, %v2070_v9  ;;  %v785_v30 = vadd.f32 %v784_v27, %v2072_v10  ;;  %v997_v38 = vmax.f32 %v973_v33, 0.0 }
 0x1c5   : > { %822 = vst [vmem:[%s2079_s28 + $0x80] sm:$0xff] %v736_v29 }
 0x1c6   : > { %823 = vst [vmem:[%s2079_s28 + $0x88] sm:$0xff] %v785_v30  ;;  %v925_v31 = vpop.f32.mrf.mxu0 }
 0x1c7   : > { %v974_v32 = vpop.f32.mrf.mxu1  ;;  %v926_v34 = vadd.f32 %v2019_v56, %v925_v31 }
 0x1c9   : > { %v975_v35 = vadd.f32 %v974_v32, %v926_v34 }
 0x1ca   : > { %v737_v36 = vpop.f32.mrf.mxu2  ;;  %v786_v37 = vpop.f32.mrf.mxu3 }
 0x1cb   : > { %v998_v39 = vmax.f32 %v975_v35, 0.0  ;;  %v738_v40 = vadd.f32 %v737_v36, %v2070_v9  ;;  %v787_v41 = vadd.f32 %v786_v37, %v2072_v10 }
 0x1cd   : > { %v1008_v42 = vpack.c.bf16 %v998_v39, %v997_v38  ;;  %824 = vst [vmem:[%s2079_s28 + $0x90] sm:$0xff] %v738_v40 }
 0x1ce   : > { %825 = vst [vmem:[%s2079_s28 + $0x98] sm:$0xff] %v787_v41  ;;  %v928_v43 = vpop.f32.mrf.mxu0 }
 0x1cf   : > { %v977_v44 = vpop.f32.mrf.mxu1  ;;  %1044 = vmatmul.bf16.gmra.mxu2 %v1008_v42  ;;  %1093 = vmatmul.bf16.gmra.mxu3 %v1008_v42  ;;  %v929_v47 = vadd.f32 %v2019_v56, %v928_v43 }
 0x1d1   : > { %v978_v49 = vadd.f32 %v977_v44, %v929_v47 }
 0x1d2   : > { %v740_v45 = vpop.f32.mrf.mxu2  ;;  %v789_v46 = vpop.f32.mrf.mxu3 }
 0x1d3   : > { %v741_v48 = vadd.f32 %v740_v45, %v2070_v9  ;;  %v790_v50 = vadd.f32 %v789_v46, %v2072_v10  ;;  %v999_v58 = vmax.f32 %v978_v49, 0.0 }
 0x1d5   : > { %826 = vst [vmem:[%s2079_s28 + $0xa0] sm:$0xff] %v741_v48 }
 0x1d6   : > { %827 = vst [vmem:[%s2079_s28 + $0xa8] sm:$0xff] %v790_v50  ;;  %v930_v52 = vpop.f32.mrf.mxu0 }
 0x1d7   : > { %v979_v53 = vpop.f32.mrf.mxu1  ;;  %v931_v54 = vadd.f32 %v2019_v56, %v930_v52 }
 0x1d9   : > { %v980_v55 = vadd.f32 %v979_v53, %v931_v54 }
 0x1da   : > { %v742_v51 = vpop.f32.mrf.mxu2  ;;  %v791_v57 = vpop.f32.mrf.mxu3 }
 0x1db   : > { %v1000_v59 = vmax.f32 %v980_v55, 0.0  ;;  %v743_v60 = vadd.f32 %v742_v51, %v2070_v9  ;;  %v792_v61 = vadd.f32 %v791_v57, %v2072_v10 }
 0x1dd   : > { %v1009_v62 = vpack.c.bf16 %v1000_v59, %v999_v58  ;;  %828 = vst [vmem:[%s2079_s28 + $0xb0] sm:$0xff] %v743_v60 }
 0x1de   : > { %829 = vst [vmem:[%s2079_s28 + $0xb8] sm:$0xff] %v792_v61  ;;  %v933_v63 = vpop.f32.mrf.mxu0 }
 0x1df   : > { %v982_v0 = vpop.f32.mrf.mxu1  ;;  %1049 = vmatmul.bf16.gmra.mxu2 %v1009_v62  ;;  %1098 = vmatmul.bf16.gmra.mxu3 %v1009_v62  ;;  %v934_v3 = vadd.f32 %v2019_v56, %v933_v63 }
 0x1e1   : > { %v983_v7 = vadd.f32 %v982_v0, %v934_v3 }
 0x1e2   : > { %v745_v1 = vpop.f32.mrf.mxu2  ;;  %v794_v2 = vpop.f32.mrf.mxu3 }
 0x1e3   : > { %v746_v4 = vadd.f32 %v745_v1, %v2070_v9  ;;  %v795_v5 = vadd.f32 %v794_v2, %v2072_v10  ;;  %v1001_v15 = vmax.f32 %v983_v7, 0.0 }
 0x1e5   : > { %830 = vst [vmem:[%s2079_s28 + $0xc0] sm:$0xff] %v746_v4 }
 0x1e6   : > { %831 = vst [vmem:[%s2079_s28 + $0xc8] sm:$0xff] %v795_v5  ;;  %v935_v6 = vpop.f32.mrf.mxu0 }
 0x1e7   : > { %v936_v8 = vadd.f32 %v2019_v56, %v935_v6  ;;  %v984_v11 = vpop.f32.mrf.mxu1 }
 0x1e9   : > { %v985_v12 = vadd.f32 %v984_v11, %v936_v8 }
 0x1ea   : > { %v747_v13 = vpop.f32.mrf.mxu2  ;;  %v796_v14 = vpop.f32.mrf.mxu3 }
 0x1eb   : > { %v1002_v16 = vmax.f32 %v985_v12, 0.0  ;;  %v748_v17 = vadd.f32 %v747_v13, %v2070_v9  ;;  %v797_v18 = vadd.f32 %v796_v14, %v2072_v10 }
 0x1ed   : > { %v1010_v19 = vpack.c.bf16 %v1002_v16, %v1001_v15  ;;  %832 = vst [vmem:[%s2079_s28 + $0xd0] sm:$0xff] %v748_v17 }
 0x1ee   : > { %833 = vst [vmem:[%s2079_s28 + $0xd8] sm:$0xff] %v797_v18 }
 0x1ef   : > { %1054 = vmatmul.bf16.gmra.mxu2 %v1010_v19  ;;  %1103 = vmatmul.bf16.gmra.mxu3 %v1010_v19 }
 0x1f2   : > { %v750_v56 = vpop.f32.mrf.mxu2  ;;  %v799_v20 = vpop.f32.mrf.mxu3 }
 0x1f3   : > { %v751_v21 = vadd.f32 %v750_v56, %v2070_v9  ;;  %v800_v22 = vadd.f32 %v799_v20, %v2072_v10 }
 0x1f5   : > { %834 = vst [vmem:[%s2079_s28 + $0xe0] sm:$0xff] %v751_v21 }
 0x1f6   : > { %835 = vst [vmem:[%s2079_s28 + $0xe8] sm:$0xff] %v800_v22 }
 0x1fa   : > { %v752_v23 = vpop.f32.mrf.mxu2  ;;  %v801_v24 = vpop.f32.mrf.mxu3 }
 0x1fb   : > { %v753_v25 = vadd.f32 %v752_v23, %v2070_v9  ;;  %v802_v26 = vadd.f32 %v801_v24, %v2072_v10 }
 0x1fd   : > { %836 = vst [vmem:[%s2079_s28 + $0xf0] sm:$0xff] %v753_v25 }
 0x1fe   : > { %837 = vst [vmem:[%s2079_s28 + $0xf8] sm:$0xff] %v802_v26 }
 0x202   : > { %v1020_v27 = vpop.f32.mrf.mxu2  ;;  %v1069_v28 = vpop.f32.mrf.mxu3 }
 0x203   : > { %v1021_v29 = vadd.f32 %v1020_v27, %v2070_v9  ;;  %v1070_v30 = vadd.f32 %v1069_v28, %v2072_v10 }
 0x205   : > { %1441 = vst [vmem:[%s2079_s28 + $0x100] sm:$0xff] %v1021_v29 }
 0x206   : > { %1442 = vst [vmem:[%s2079_s28 + $0x108] sm:$0xff] %v1070_v30 }
 0x20a   : > { %v1022_v31 = vpop.f32.mrf.mxu2  ;;  %v1071_v32 = vpop.f32.mrf.mxu3 }
 0x20b   : > { %v1023_v33 = vadd.f32 %v1022_v31, %v2070_v9  ;;  %v1072_v34 = vadd.f32 %v1071_v32, %v2072_v10 }
 0x20d   : > { %1443 = vst [vmem:[%s2079_s28 + $0x110] sm:$0xff] %v1023_v33 }
 0x20e   : > { %1444 = vst [vmem:[%s2079_s28 + $0x118] sm:$0xff] %v1072_v34 }
 0x212   : > { %v1025_v35 = vpop.f32.mrf.mxu2  ;;  %v1074_v36 = vpop.f32.mrf.mxu3 }
 0x213   : > { %v1026_v37 = vadd.f32 %v1025_v35, %v2070_v9  ;;  %v1075_v38 = vadd.f32 %v1074_v36, %v2072_v10 }
 0x215   : > { %1445 = vst [vmem:[%s2079_s28 + $0x120] sm:$0xff] %v1026_v37 }
 0x216   : > { %1446 = vst [vmem:[%s2079_s28 + $0x128] sm:$0xff] %v1075_v38 }
 0x21a   : > { %v1027_v39 = vpop.f32.mrf.mxu2  ;;  %v1076_v40 = vpop.f32.mrf.mxu3 }
 0x21b   : > { %v1028_v41 = vadd.f32 %v1027_v39, %v2070_v9  ;;  %v1077_v42 = vadd.f32 %v1076_v40, %v2072_v10 }
 0x21d   : > { %1447 = vst [vmem:[%s2079_s28 + $0x130] sm:$0xff] %v1028_v41 }
 0x21e   : > { %1448 = vst [vmem:[%s2079_s28 + $0x138] sm:$0xff] %v1077_v42 }
 0x222   : > { %v1030_v43 = vpop.f32.mrf.mxu2  ;;  %v1079_v44 = vpop.f32.mrf.mxu3 }
 0x223   : > { %v1031_v45 = vadd.f32 %v1030_v43, %v2070_v9  ;;  %v1080_v46 = vadd.f32 %v1079_v44, %v2072_v10 }
 0x225   : > { %1449 = vst [vmem:[%s2079_s28 + $0x140] sm:$0xff] %v1031_v45 }
 0x226   : > { %1450 = vst [vmem:[%s2079_s28 + $0x148] sm:$0xff] %v1080_v46 }
 0x22a   : > { %v1032_v47 = vpop.f32.mrf.mxu2  ;;  %v1081_v48 = vpop.f32.mrf.mxu3 }
 0x22b   : > { %v1033_v50 = vadd.f32 %v1032_v47, %v2070_v9  ;;  %v1082_v52 = vadd.f32 %v1081_v48, %v2072_v10 }
 0x22d   : > { %1451 = vst [vmem:[%s2079_s28 + $0x150] sm:$0xff] %v1033_v50 }
 0x22e   : > { %1452 = vst [vmem:[%s2079_s28 + $0x158] sm:$0xff] %v1082_v52 }
 0x232   : > { %v1035_v53 = vpop.f32.mrf.mxu2  ;;  %v1084_v49 = vpop.f32.mrf.mxu3 }
 0x233   : > { %v1036_v54 = vadd.f32 %v1035_v53, %v2070_v9  ;;  %v1085_v55 = vadd.f32 %v1084_v49, %v2072_v10 }
 0x235   : > { %1453 = vst [vmem:[%s2079_s28 + $0x160] sm:$0xff] %v1036_v54 }
 0x236   : > { %1454 = vst [vmem:[%s2079_s28 + $0x168] sm:$0xff] %v1085_v55 }
 0x23a   : > { %v1037_v51 = vpop.f32.mrf.mxu2  ;;  %v1086_v57 = vpop.f32.mrf.mxu3 }
 0x23b   : > { %v1038_v58 = vadd.f32 %v1037_v51, %v2070_v9  ;;  %v1087_v59 = vadd.f32 %v1086_v57, %v2072_v10 }
 0x23d   : > { %1455 = vst [vmem:[%s2079_s28 + $0x170] sm:$0xff] %v1038_v58 }
 0x23e   : > { %1456 = vst [vmem:[%s2079_s28 + $0x178] sm:$0xff] %v1087_v59 }
 0x242   : > { %v1040_v60 = vpop.f32.mrf.mxu2  ;;  %v1089_v61 = vpop.f32.mrf.mxu3 }
 0x243   : > { %v1041_v62 = vadd.f32 %v1040_v60, %v2070_v9  ;;  %v1090_v63 = vadd.f32 %v1089_v61, %v2072_v10 }
 0x245   : > { %1457 = vst [vmem:[%s2079_s28 + $0x180] sm:$0xff] %v1041_v62 }
 0x246   : > { %1458 = vst [vmem:[%s2079_s28 + $0x188] sm:$0xff] %v1090_v63 }
 0x24a   : > { %v1042_v0 = vpop.f32.mrf.mxu2  ;;  %v1091_v1 = vpop.f32.mrf.mxu3 }
 0x24b   : > { %v1043_v2 = vadd.f32 %v1042_v0, %v2070_v9  ;;  %v1092_v3 = vadd.f32 %v1091_v1, %v2072_v10 }
 0x24d   : > { %1459 = vst [vmem:[%s2079_s28 + $0x190] sm:$0xff] %v1043_v2 }
 0x24e   : > { %1460 = vst [vmem:[%s2079_s28 + $0x198] sm:$0xff] %v1092_v3 }
 0x252   : > { %v1045_v4 = vpop.f32.mrf.mxu2  ;;  %v1094_v5 = vpop.f32.mrf.mxu3 }
 0x253   : > { %v1046_v6 = vadd.f32 %v1045_v4, %v2070_v9  ;;  %v1095_v7 = vadd.f32 %v1094_v5, %v2072_v10 }
 0x255   : > { %1461 = vst [vmem:[%s2079_s28 + $0x1a0] sm:$0xff] %v1046_v6 }
 0x256   : > { %1462 = vst [vmem:[%s2079_s28 + $0x1a8] sm:$0xff] %v1095_v7 }
 0x25a   : > { %v1047_v8 = vpop.f32.mrf.mxu2  ;;  %v1096_v11 = vpop.f32.mrf.mxu3 }
 0x25b   : > { %v1048_v12 = vadd.f32 %v1047_v8, %v2070_v9  ;;  %v1097_v13 = vadd.f32 %v1096_v11, %v2072_v10 }
 0x25d   : > { %1463 = vst [vmem:[%s2079_s28 + $0x1b0] sm:$0xff] %v1048_v12 }
 0x25e   : > { %1464 = vst [vmem:[%s2079_s28 + $0x1b8] sm:$0xff] %v1097_v13 }
 0x262   : > { %v1050_v14 = vpop.f32.mrf.mxu2  ;;  %v1099_v15 = vpop.f32.mrf.mxu3 }
 0x263   : > { %v1051_v16 = vadd.f32 %v1050_v14, %v2070_v9  ;;  %v1100_v17 = vadd.f32 %v1099_v15, %v2072_v10 }
 0x265   : > { %1465 = vst [vmem:[%s2079_s28 + $0x1c0] sm:$0xff] %v1051_v16 }
 0x266   : > { %1466 = vst [vmem:[%s2079_s28 + $0x1c8] sm:$0xff] %v1100_v17 }
 0x26a   : > { %v1052_v18 = vpop.f32.mrf.mxu2  ;;  %v1101_v19 = vpop.f32.mrf.mxu3 }
 0x26b   : > { %v1053_v56 = vadd.f32 %v1052_v18, %v2070_v9  ;;  %v1102_v20 = vadd.f32 %v1101_v19, %v2072_v10 }
 0x26d   : > { %1467 = vst [vmem:[%s2079_s28 + $0x1d0] sm:$0xff] %v1053_v56 }
 0x26e   : > { %1468 = vst [vmem:[%s2079_s28 + $0x1d8] sm:$0xff] %v1102_v20 }
 0x272   : > { %v1055_v21 = vpop.f32.mrf.mxu2  ;;  %v1104_v22 = vpop.f32.mrf.mxu3 }
 0x273   : > { %v1056_v23 = vadd.f32 %v1055_v21, %v2070_v9  ;;  %v1105_v24 = vadd.f32 %v1104_v22, %v2072_v10 }
 0x275   : > { %1469 = vst [vmem:[%s2079_s28 + $0x1e0] sm:$0xff] %v1056_v23 }
 0x276   : > { %1470 = vst [vmem:[%s2079_s28 + $0x1e8] sm:$0xff] %v1105_v24 }
 0x27a   : > { %v1057_v25 = vpop.f32.mrf.mxu2  ;;  %v1106_v26 = vpop.f32.mrf.mxu3  ;;  %1150 = sbr.rel (!%p1867_p11) target bundleno = 670 (0x29e), region = 56 }
 0x27b   : > { %v1058_v27 = vadd.f32 %v1057_v25, %v2070_v9  ;;  %v1107_v28 = vadd.f32 %v1106_v26, %v2072_v10 }
 0x27d   : > { %1471 = vst [vmem:[%s2079_s28 + $0x1f0] sm:$0xff] %v1058_v27 }
 0x27e   : > { %1472 = vst [vmem:[%s2079_s28 + $0x1f8] sm:$0xff] %v1107_v28 }
 0x27f   : > { %s2310_s8 = smov (!%p1153_p6, %s1152_s8), 32 }
 0x280   : > { %s1519_s25 = sshll.u32 %s2310_s8, 4 }
 0x281   : > { %s1157_s23 = ssub.s32 512, %s1519_s25 }
 0x282   : > { %s1158_s12 = sshll.u32 %s1157_s23, 4 }
 0x283   : > { %1159 = vsyncadd %s1144_s11, %s1158_s12  ;;  %p2229_p13 = scmp.ne.s32.totalorder %s1519_s25, 0  ;;  %s1521_s16 = sshll.u32 %s1836_s22, 9 }
 0x284   : > { %s1163_s10 = scalar_lea.hbm %s2287_s5, %s1521_s16  ;;  %s1165_s26 = sshll.u32 %s2079_s28, 4  ;;  %s2238_s26 = int_to_ptr.vmem [resolvable:$true] %s1165_s26 }
 0x285   : > { %s1167_s29 = sshll.u32 %s1163_s10, 4  ;;  %s1481_s7 = sshll.u32 %s2310_s8, 8  ;;  %s2240_s29 = int_to_ptr.hbm [resolvable:$true] %s1167_s29 }
 0x286   : > { %s1690_s14 = sshra.s32 %s2238_s26, 4  ;;  %s1692_s15 = sshrl.u32 %s1481_s7, 4  ;;  %s1691_s14 = int_to_ptr.vmem [resolvable:$true] %s1690_s14 }
 0x287   : > { %s1697_s9 = scalar_lea.vmem %s1691_s14, %s1692_s15  ;;  %s1782_s22 = smov [#allocation8]  }
 0x288   : > { %p1698_p11 = scmp.ne.s32.totalorder %s1691_s14, %s1697_s9  ;;  %s1701_s25 = scalar_lea.vmem %s1782_s22, 1024 }
 0x289   : > { %p1703_p10 = scmp.lt.s32.totalorder %s1701_s25, %s1697_s9 }
 0x28a   : > { %p1699_p5 = pnand %p1698_p11, %p2229_p13 }
 0x28c   : > { %p1700_p9 = pneg %p1699_p5 }
 0x28e   : > { %p1705_p1 = pnand %p1703_p10, %p1700_p9 }
 0x290   : > { %1708 = shalt.err (!%p1705_p1)
}
 0x291   : > { %s1709_s28 = sshra.s32 %s2240_s29, 4  ;;  %s1720_s17 = scalar_lea.hbm %s2287_s5, 2000  ;;  %s1710_s28 = int_to_ptr.hbm [resolvable:$true] %s1709_s28 }
 0x292   : > { %s1716_s23 = scalar_lea.hbm %s1710_s28, %s1692_s15  ;;  %p1721_p7 = scmp.lt.s32.totalorder %s1710_s28, %s2287_s5 }
 0x293   : > { %p1717_p0 = scmp.ne.s32.totalorder %s1710_s28, %s1716_s23  ;;  %p1722_p8 = scmp.lt.s32.totalorder %s1720_s17, %s1716_s23 }
 0x295   : > { %p1718_p2 = pnand %p1717_p0, %p2229_p13  ;;  %p1723_p4 = por %p1722_p8, %p1721_p7 }
 0x297   : > { %p1719_p3 = pneg %p1718_p2 }
 0x299   : > { %p1724_p12 = pnand %p1723_p4, %p1719_p3 }
 0x29b   : > { %1727 = shalt.err (!%p1724_p12)
}
 0x29c   : > { %s1783_s14 = smov 256   ;;  %s1784_s15 = smov 16  }
 0x29d   : > { %1173 = dma.vmem_to_hbm [thread:$0]  (%p2229_p13), %s2238_s26, %s1481_s7, %s2240_s29, %s1144_s11, %s1783_s14, %s1783_s14, %s1784_s15  }
 0x29e PF: > { %p1547_p6 = scmp.ge.s32.totalorder %s1771_s21, 2  ;;  %s1182_s9 = sand.u32 1, %s1759_s18  }
 0x29f   : > { %p2302_p11 = scmp.ne.s32.totalorder %s2294_s6, 0  ;;  %s1183_s22 = scalar_lea.sflag [#allocation4], %s1182_s9 }
 0x2a1   : > { %p1540_p5 = pnand %p1547_p6, %p2302_p11 }
 0x2a3   : > { %p1541_p9 = pneg %p1540_p5 }
 0x2a5   : > { %1754 = dma.done.wait (%p1541_p9), %s1183_s22, 8192  }
 0x2a6   : > { %1756 = vsyncadd (%p1541_p9), %s1183_s22, 4294959104  ;;  %p19_p10 = scmp.ge.s32.totalorder %s1840_s24, 6   ;;  %s2303_s18 = smov %s1763_s19 }
 0x2a7   : > { %s2304_s19 = smov %s1767_s20  ;;  %s2305_s20 = smov %s1852_s27 }
 0x2a8   : > { %s2306_s21 = smov %s1840_s24  ;;  %21 = sbr.rel (!%p19_p10) target bundleno = 8 (0x8), region = 97 }
 0x2ad   :  { %1189 = vsyncpa [#allocation3], 1 }
 0x2ae   :  { %1191 = vsyncpa [#allocation3 + $0x1], 1 }
 0x2af   :  { %1192 = vsyncpa [#allocation6], 1 }
 0x2b0   :  { %1193 = vsyncpa [#allocation4], 1 }
 0x2b1   :  { %1195 = vsyncpa [#allocation4 + $0x1], 1 }

</bundles_post_ra>
